<compile_context>
chip_gen: v6e
topology: v6e:2x2x1
jax: 0.10.0
libtpu: 0.0.40
codegen_flags: <defaults>
</compile_context>

<pallas_src>
import numpy as np
import jax
import jax.numpy as jnp
from jax.experimental import pallas as pl
from jax.experimental.pallas import tpu as pltpu


def _round_up(v, m):
    return ((v + m - 1) // m) * m


# Tile caps (generation-safe):
#   _BT_MAX = 512: already compute-bound on v5e (crossover ~240 FLOP/B) and
#     ~256 FLOP/B intensity on v6e/v7x with a <= 20 MiB working set.
#     TODO(synk): bump to 1024 on v6e (128 MiB VMEM) for very large batches.
#   _TK_CAP = 4096: bf16 input panels 2*(tm+tn)*tk*2 B = 16 MiB at 512 tiles.
_BT_MAX = 512
_TK_CAP = 4096


def _cosine_sim_T_kernel(y_ref, x_ref, yn_ref, xn_ref, o_ref):
    # y_ref : (tm, tk) bf16  rows i of y  (output rows)
    # x_ref : (tn, tk) bf16  rows j of x  (output cols)
    # yn_ref: (tm, 1)  f32   ||y_i||
    # xn_ref: (1, tn)  f32   ||x_j||
    # o_ref : (tm, tn) f32   S[i, j]; VMEM-resident across the whole k sweep
    #                        (output block index is constant over k), so it
    #                        doubles as the accumulator — no scratch needed.
    k = pl.program_id(2)

    # MXU: contract the shared feature axis of the natural [*, D] layouts
    # (no explicit transpose / relayout), f32 accumulation.
    part = jax.lax.dot_general(
        y_ref[...],
        x_ref[...],
        dimension_numbers=(((1,), (1,)), ((), ())),
        preferred_element_type=jnp.float32,
    )

    @pl.when(k == 0)
    def _():
        o_ref[...] = part

    @pl.when(k > 0)
    def _():
        o_ref[...] += part

    @pl.when(k == pl.num_programs(2) - 1)
    def _():
        # (tm,1) * (1,tn) -> (tm,tn): pure broadcast multiply, no relayout.
        # eps clamp on the *product* of norms matches the PyTorch reference;
        # the reciprocal goes to the EUP slot (approx=True), ~free.
        denom = jnp.maximum(yn_ref[...] * xn_ref[...], 1e-8)
        o_ref[...] = o_ref[...] * pl.reciprocal(denom, approx=True)


def cosine_similarity_T(x, y, *, mxu_dtype=jnp.bfloat16):
    """S = similarity.T, shape (B, B), float32.

    S[i, j] = (y_i . x_j) / max(||y_i|| * ||x_j||, 1e-8)
    Dot products run on the MXU in bf16 with f32 accumulation; the epilogue
    (norm product, clamp, reciprocal) is f32.
    """
    B, D = x.shape
    assert y.shape == (B, D)

    # Row norms in f32 — one fused pass over the inputs (tiny vs. the tiled
    # matmul traffic), sharing the read with the bf16 casts below.
    xn = jnp.sqrt(jnp.sum(x.astype(jnp.float32) ** 2, axis=1))  # (B,)
    yn = jnp.sqrt(jnp.sum(y.astype(jnp.float32) ** 2, axis=1))  # (B,)

    B128 = _round_up(max(B, 128), 128)
    D128 = _round_up(max(D, 128), 128)

    # Output tile: the largest multiple-of-128 tile (<= _BT_MAX) that keeps the
    # batch-axis zero-padding overhead <= 25% — pad-to-tile, never shrink-tile.
    tm = 128
    for t in (_BT_MAX, 256):
        if t <= B128 and _round_up(B128, t) * 4 <= B128 * 5:
            tm = t
            break
    tn = tm
    Bp = _round_up(B128, tm)

    # Reduction tile: collapse the k axis entirely when the panels fit the
    # budget (one MXU pass per output tile, no init/accumulate branching at
    # runtime); otherwise large fixed 2048-wide panels.
    if D128 <= _TK_CAP:
        tk, Dp = D128, D128
    else:
        tk = 2048
        Dp = _round_up(D128, tk)

    # MXU-dtype copies, padded only when needed (aligned case = single cast).
    def pad2(a):
        a = a.astype(mxu_dtype)
        if a.shape == (Bp, Dp):
            return a
        return jnp.pad(a, ((0, Bp - a.shape[0]), (0, Dp - a.shape[1])))

    x_p = pad2(x)
    y_p = pad2(y)
    yn_p = (yn if B == Bp else jnp.pad(yn, (0, Bp - B))).reshape(Bp, 1)
    xn_p = (xn if B == Bp else jnp.pad(xn, (0, Bp - B))).reshape(1, Bp)

    # Explicit VMEM budget for the chosen tiles (double-buffered inputs,
    # resident + writeback output buffer, norm vectors) with 1.5x headroom,
    # floored at 32 MiB and capped at 48 MiB (safe on v7x's 64 MiB physical).
    itemsize = np.dtype(mxu_dtype).itemsize
    working_set = (
        2 * (tm + tn) * tk * itemsize   # bf16 input panels, 2 buffers each
        + 2 * tm * tn * 4               # f32 output tile, 2 buffers
        + 4 * (tm + tn) * 4             # norm vectors, 2 buffers each (tiny)
    )
    vmem_limit = int(min(max(working_set * 3 // 2, 32 << 20), 48 << 20))

    grid = (Bp // tm, Bp // tn, Dp // tk)

    sim_p = pl.pallas_call(
        _cosine_sim_T_kernel,
        out_shape=jax.ShapeDtypeStruct((Bp, Bp), jnp.float32),
        grid_spec=pltpu.PrefetchScalarGridSpec(
            num_scalar_prefetch=0,
            grid=grid,
            in_specs=[
                pl.BlockSpec((tm, tk), lambda i, j, k: (i, k)),  # y rows
                pl.BlockSpec((tn, tk), lambda i, j, k: (j, k)),  # x rows
                pl.BlockSpec((tm, 1), lambda i, j, k: (i, 0)),   # ||y_i||
                pl.BlockSpec((1, tn), lambda i, j, k: (0, j)),   # ||x_j||
            ],
            out_specs=pl.BlockSpec((tm, tn), lambda i, j, k: (i, j)),
        ),
        compiler_params=pltpu.CompilerParams(
            # Output axes parallel (megacore / 2-TC sharding on v7x),
            # reduction axis last and arbitrary (output tile carried across it).
            # TODO(synk): if an xprof trace shows one idle TC on v7x, switch the
            # leading axis to pltpu.CORE_PARALLEL.
            dimension_semantics=("parallel", "parallel", "arbitrary"),
            vmem_limit_bytes=vmem_limit,
        ),
    )(y_p, x_p, yn_p, xn_p)

    return sim_p[:B, :B]


def classifier_forward(Z, Y, top_k=None):
    """Mirrors Classifier.forward (the normalize_image_features branch is a
    no-op in the reference forward).  Returns device scalars
    (top1accuracy, top10accuracy[, topkaccuracy]) — no host syncs."""
    B = Z.shape[0]
    x = Z.reshape(B, -1)
    y = Y.reshape(B, -1)

    sim_T = cosine_similarity_T(x, y)  # == similarity.T in the PyTorch code

    diags = jnp.arange(B)

    # top-1: argmax over axis=1 equals the diagonal label.
    top1 = jnp.mean((jnp.argmax(sim_T, axis=1) == diags).astype(jnp.float32))

    # Single top-k pass covering both top-10 and (optional) top_k.
    # TODO(synk): for very large B, fuse a running top-k over the column-tile
    # axis into the kernel (flash-attention style) to avoid the O(B^2) HBM
    # write-back of the full similarity matrix.
    k_eff = 10 if top_k is None else max(10, int(top_k))
    k_eff = min(k_eff, B)
    _, topk_idx = jax.lax.top_k(sim_T, k_eff)          # sorted descending
    hit = topk_idx == diags[:, None]                   # (B, k_eff)
    top10 = jnp.mean(jnp.any(hit[:, : min(10, B)], axis=1).astype(jnp.float32))

    if top_k is None:
        return top1, top10
    topk = jnp.mean(jnp.any(hit[:, : min(int(top_k), B)], axis=1).astype(jnp.float32))
    return top1, top10, topk


def _ref_sim_T(xr, yr):
    dots = yr @ xr.T
    denom = jnp.maximum(
        jnp.linalg.norm(yr, axis=1, keepdims=True)
        * jnp.linalg.norm(xr, axis=1, keepdims=True).T,
        1e-8,
    )
    return dots / denom


if __name__ == "__main__":
    key = jax.random.PRNGKey(0)
    kz, ky, kx2, ky2 = jax.random.split(key, 4)

    # Small shapes matching the module: image features Z (B, C, H, W) -> D = 1024,
    # paired features Y (B, D); batch=16 so top-10 is well defined.
    B, C, H, W = 16, 4, 16, 16
    D = C * H * W
    Z = jax.random.normal(kz, (B, C, H, W), dtype=jnp.float32)
    # Make Y correlated with Z so accuracies are non-trivial (deterministic).
    Y = Z.reshape(B, D) + 0.1 * jax.random.normal(ky, (B, D), dtype=jnp.float32)

    # Single-k-step path (grid (1,1,1) at these shapes).
    sim_T = cosine_similarity_T(Z.reshape(B, -1), Y)
    jax.block_until_ready(sim_T)
    ref = _ref_sim_T(Z.reshape(B, D), Y)
    assert jnp.allclose(sim_T, ref, atol=3e-2), "similarity mismatch vs reference (demo)"

    # Exercise the multi-k accumulation + padding path (D > _TK_CAP -> 3 k-steps,
    # B pads 40 -> 128), still small.
    B2, D2 = 40, 4608
    x2 = jax.random.normal(kx2, (B2, D2), dtype=jnp.float32)
    y2 = x2 + 0.1 * jax.random.normal(ky2, (B2, D2), dtype=jnp.float32)
    sim2 = cosine_similarity_T(x2, y2)
    jax.block_until_ready(sim2)
    assert jnp.allclose(sim2, _ref_sim_T(x2, y2), atol=3e-2), "similarity mismatch (multi-k)"

    top1, top10 = classifier_forward(Z, Y)
    res3 = classifier_forward(Z, Y, top_k=5)
    jax.block_until_ready((top1, top10, res3))

    print("KERNEL_OK")
</pallas_src>

<mosaic_0001>
module attributes {stable_mosaic.version = 11 : i64} {
  func.func @_cosine_sim_T_kernel(%arg0: i32, %arg1: i32, %arg2: i32, %arg3: memref<128x1024xbf16, #tpu.memory_space<vmem>>, %arg4: memref<128x1024xbf16, #tpu.memory_space<vmem>>, %arg5: memref<128x1xf32, #tpu.memory_space<vmem>>, %arg6: memref<1x128xf32, #tpu.memory_space<vmem>>, %arg7: memref<128x128xf32, #tpu.memory_space<vmem>>) attributes {dimension_semantics = [#tpu.dimension_semantics<parallel>, #tpu.dimension_semantics<parallel>, #tpu.dimension_semantics<arbitrary>], iteration_bounds = array<i64: 1, 1, 1>, scalar_prefetch = 0 : i64, scratch_operands = 0 : i64, tpu.core_type = #tpu.core_type<tc>, window_params = [{transform_indices = @transform_0, window_bounds = array<i64: 128, 1024>}, {transform_indices = @transform_1, window_bounds = array<i64: 128, 1024>}, {transform_indices = @transform_2, window_bounds = array<i64: 128, 1>}, {transform_indices = @transform_3, window_bounds = array<i64: 1, 128>}, {transform_indices = @transform_4, window_bounds = array<i64: 128, 128>}]} {
    %c0 = arith.constant 0 : index
    %c0_0 = arith.constant 0 : index
    %0 = vector.load %arg3[%c0, %c0_0] : memref<128x1024xbf16, #tpu.memory_space<vmem>>, vector<128x1024xbf16>
    %c0_1 = arith.constant 0 : index
    %c0_2 = arith.constant 0 : index
    %1 = vector.load %arg4[%c0_1, %c0_2] : memref<128x1024xbf16, #tpu.memory_space<vmem>>, vector<128x1024xbf16>
    %cst = arith.constant dense<0.000000e+00> : vector<128x128xf32>
    %2 = tpu.matmul %0, %1, %cst {dimension_numbers = #tpu.dot_dimension_numbers<[1], [1], [0], [0], [0, 0, 1, 0], [], []>} : vector<128x1024xbf16>, vector<128x1024xbf16>, vector<128x128xf32> -> vector<128x128xf32>
    %c0_i32 = arith.constant 0 : i32
    %3 = arith.cmpi eq, %arg2, %c0_i32 : i32
    %4 = arith.extui %3 : i1 to i32
    %c0_i32_3 = arith.constant 0 : i32
    %5 = arith.cmpi ne, %4, %c0_i32_3 : i32
    scf.if %5 {
      %c0_8 = arith.constant 0 : index
      %c0_9 = arith.constant 0 : index
      %12 = vector.load %arg7[%c0_8, %c0_9] : memref<128x128xf32, #tpu.memory_space<vmem>>, vector<128x128xf32>
      tpu.vector_store %arg7[%c0_8, %c0_9], %2 {strides = array<i32>} : memref<128x128xf32, #tpu.memory_space<vmem>>, vector<128x128xf32>,
    } else {
    }
    %c0_i32_4 = arith.constant 0 : i32
    %6 = arith.cmpi sgt, %arg2, %c0_i32_4 : i32
    %7 = arith.extui %6 : i1 to i32
    %c0_i32_5 = arith.constant 0 : i32
    %8 = arith.cmpi ne, %7, %c0_i32_5 : i32
    scf.if %8 {
      %c0_8 = arith.constant 0 : index
      %c0_9 = arith.constant 0 : index
      %12 = vector.load %arg7[%c0_8, %c0_9] : memref<128x128xf32, #tpu.memory_space<vmem>>, vector<128x128xf32>
      %13 = arith.addf %12, %2 : vector<128x128xf32>
      %c0_10 = arith.constant 0 : index
      %c0_11 = arith.constant 0 : index
      %14 = vector.load %arg7[%c0_10, %c0_11] : memref<128x128xf32, #tpu.memory_space<vmem>>, vector<128x128xf32>
      tpu.vector_store %arg7[%c0_10, %c0_11], %13 {strides = array<i32>} : memref<128x128xf32, #tpu.memory_space<vmem>>, vector<128x128xf32>,
    } else {
    }
    %c0_i32_6 = arith.constant 0 : i32
    %9 = arith.cmpi eq, %arg2, %c0_i32_6 : i32
    %10 = arith.extui %9 : i1 to i32
    %c0_i32_7 = arith.constant 0 : i32
    %11 = arith.cmpi ne, %10, %c0_i32_7 : i32
    scf.if %11 {
      %c0_8 = arith.constant 0 : index
      %c0_9 = arith.constant 0 : index
      %12 = vector.load %arg5[%c0_8, %c0_9] : memref<128x1xf32, #tpu.memory_space<vmem>>, vector<128x1xf32>
      %c0_10 = arith.constant 0 : index
      %c0_11 = arith.constant 0 : index
      %13 = vector.load %arg6[%c0_10, %c0_11] : memref<1x128xf32, #tpu.memory_space<vmem>>, vector<1x128xf32>
      %14 = vector.broadcast %12 : vector<128x1xf32> to vector<128x128xf32>
      %15 = vector.broadcast %13 : vector<1x128xf32> to vector<128x128xf32>
      %16 = arith.mulf %14, %15 : vector<128x128xf32>
      %cst_12 = arith.constant 9.99999993E-9 : f32
      %17 = vector.broadcast %cst_12 : f32 to vector<128x128xf32>
      %18 = arith.maximumf %16, %17 : vector<128x128xf32>
      %c0_13 = arith.constant 0 : index
      %c0_14 = arith.constant 0 : index
      %19 = vector.load %arg7[%c0_13, %c0_14] : memref<128x128xf32, #tpu.memory_space<vmem>>, vector<128x128xf32>
      %20 = tpu.reciprocal %18 {approx = true} : vector<128x128xf32> -> vector<128x128xf32>
      %21 = arith.mulf %19, %20 : vector<128x128xf32>
      %c0_15 = arith.constant 0 : index
      %c0_16 = arith.constant 0 : index
      %22 = vector.load %arg7[%c0_15, %c0_16] : memref<128x128xf32, #tpu.memory_space<vmem>>, vector<128x128xf32>
      tpu.vector_store %arg7[%c0_15, %c0_16], %21 {strides = array<i32>} : memref<128x128xf32, #tpu.memory_space<vmem>>, vector<128x128xf32>,
    } else {
    }
    return
  }
  func.func @transform_0(%arg0: i32, %arg1: i32, %arg2: i32) -> (i32, i32) {
    %c0_i32 = arith.constant 0 : i32
    return %arg0, %arg2 : i32, i32
  }
  func.func @transform_1(%arg0: i32, %arg1: i32, %arg2: i32) -> (i32, i32) {
    %c0_i32 = arith.constant 0 : i32
    return %arg1, %arg2 : i32, i32
  }
  func.func @transform_2(%arg0: i32, %arg1: i32, %arg2: i32) -> (i32, i32) {
    %c0_i32 = arith.constant 0 : i32
    %c0_i32_0 = arith.constant 0 : i32
    return %arg0, %c0_i32 : i32, i32
  }
  func.func @transform_3(%arg0: i32, %arg1: i32, %arg2: i32) -> (i32, i32) {
    %c0_i32 = arith.constant 0 : i32
    %c0_i32_0 = arith.constant 0 : i32
    return %c0_i32, %arg1 : i32, i32
  }
  func.func @transform_4(%arg0: i32, %arg1: i32, %arg2: i32) -> (i32, i32) {
    %c0_i32 = arith.constant 0 : i32
    return %arg0, %arg1 : i32, i32
  }
}

</mosaic_0001>

<bundles_post_ra>
// kernel: tpu_custom_call.1
= control target key start
LH: loop header
LB: loop body
LE: loop exit
PB: predicated region body
PF: predicated region fallthrough
CT: control target
= control target key end

     0   :  { %9 = vsyncpa [#allocation3], 0  ;;  %s1955_s0 = inlined_call_operand.hbm [shape: bf16[128,1024], index: 0, kind: input, shape index: {}]   ;;  %s1956_s1 = inlined_call_operand.hbm [shape: bf16[128,1024], index: 1, kind: input, shape index: {}]   ;;  %s1957_s2 = inlined_call_operand.vmem [shape: f32[128,1], index: 2, kind: input, shape index: {}]   ;;  %s1958_s3 = inlined_call_operand.vmem [shape: f32[1,128], index: 3, kind: input, shape index: {}]   ;;  %s1959_s4 = inlined_call_operand.hbm [shape: f32[128,128], index: 4, kind: output, shape index: {}]  }
   0x1   :  { %10 = vsyncpa [#allocation6], 0 }
   0x2   :  { %11 = vsyncpa [#allocation4], 0  ;;  %s1732_s15 = smov [#allocation2]  }
   0x3   :  { %s17_s16 = sshll.u32 %s1732_s15, 4  ;;  %s18_s16 = int_to_ptr.vmem [resolvable:$true] %s17_s16 }
   0x4   :  { %s1674_s17 = scalar_lea.vmem %s18_s16, 8192  ;;  %p1679_p1 = scmp.lt.s32.totalorder %s18_s16, %s18_s16 }
   0x5   :  { %p1675_p0 = scmp.ne.s32.totalorder %s18_s16, %s1674_s17  ;;  %p1680_p2 = scmp.lt.s32.totalorder %s1674_s17, %s1674_s17 }
   0x7   :  { %p1681_p3 = por %p1680_p2, %p1679_p1 }
   0x9   :  { %p1682_p4 = pnand %p1681_p3, %p1675_p0 }
   0xb   :  { %1685 = shalt.err (!%p1682_p4)
}
   0xc   :  { %s1733_s18 = smov 512   ;;  %s1734_s19 = smov 32  }
   0xd   :  { %23 = dma.hbm_to_vmem [thread:$0]  %s1955_s0, 8192, %s18_s16, [#allocation3], %s1733_s18, %s1733_s18, %s1734_s19  }
   0xe   :  { %s1735_s22 = smov [#allocation5]  }
   0xf   :  { %s29_s23 = sshll.u32 %s1735_s22, 4  ;;  %s30_s23 = int_to_ptr.vmem [resolvable:$true] %s29_s23 }
  0x10   :  { %s1694_s24 = scalar_lea.vmem %s30_s23, 8192  ;;  %p1699_p6 = scmp.lt.s32.totalorder %s30_s23, %s30_s23 }
  0x11   :  { %p1695_p5 = scmp.ne.s32.totalorder %s30_s23, %s1694_s24  ;;  %p1700_p7 = scmp.lt.s32.totalorder %s1694_s24, %s1694_s24 }
  0x13   :  { %p1701_p8 = por %p1700_p7, %p1699_p6 }
  0x15   :  { %p1702_p9 = pnand %p1701_p8, %p1695_p5 }
  0x17   :  { %1705 = shalt.err (!%p1702_p9)
}
  0x18   :  { %35 = dma.hbm_to_vmem [thread:$0]  %s1956_s1, 8192, %s30_s23, [#allocation6], %s1733_s18, %s1733_s18, %s1734_s19  }
  0x19   :  { %1726 = dma.done.wait [#allocation3], 8192  }
  0x1a   :  { %1727 = vsyncadd [#allocation3], 4294959104 }
  0x1b   :  { %1728 = dma.done.wait [#allocation6], 8192  }
  0x1c   :  { %1729 = vsyncadd [#allocation6], 4294959104  ;;  %v167_v0 = vld [vmem:[#allocation5 + $0x1c0] sm:$0xff]  ;;  %v168_v2 = vld [vmem:[#allocation5 + $0x1c8] sm:$0xff] }
  0x1d   :  { %v171_v1 = vld [vmem:[#allocation5 + $0x1e0] sm:$0xff]  ;;  %v172_v4 = vld [vmem:[#allocation5 + $0x1e8] sm:$0xff] }
  0x1e   :  { %v1616_v3 = vcombine.high %v167_v0, %v171_v1  ;;  %v1615_v5 = vcombine.low %v167_v0, %v171_v1  ;;  %v159_v6 = vld [vmem:[#allocation5 + $0x180] sm:$0xff]  ;;  %v1618_v8 = vcombine.high %v168_v2, %v172_v4  ;;  %v1617_v9 = vcombine.low %v168_v2, %v172_v4  ;;  %v160_v11 = vld [vmem:[#allocation5 + $0x188] sm:$0xff]  ;;  %v169_v4 = vld [vmem:[#allocation5 + $0x1d0] sm:$0xff] }
  0x1f   :  { %v163_v7 = vld [vmem:[#allocation5 + $0x1a0] sm:$0xff]  ;;  %v164_v12 = vld [vmem:[#allocation5 + $0x1a8] sm:$0xff] }
  0x20   :  { %v1608_v10 = vcombine.high %v159_v6, %v163_v7  ;;  %815 = vmatprep.subr.bf16.mxu0 %v1616_v3  ;;  %v1610_v13 = vcombine.high %v160_v11, %v164_v12  ;;  %912 = vmatprep.subr.bf16.mxu1 %v1618_v8  ;;  %v151_v14 = vld [vmem:[#allocation5 + $0x140] sm:$0xff]  ;;  %v152_v16 = vld [vmem:[#allocation5 + $0x148] sm:$0xff]  ;;  %v1607_v18 = vcombine.low %v159_v6, %v163_v7  ;;  %v170_v6 = vld [vmem:[#allocation5 + $0x1d8] sm:$0xff] }
  0x21   :  { %816 = vmatpush1.bf16.xpose.msra.mxu0 %v1615_v5  ;;  %913 = vmatpush1.bf16.xpose.msra.mxu1 %v1617_v9  ;;  %v155_v15 = vld [vmem:[#allocation5 + $0x160] sm:$0xff]  ;;  %v156_v17 = vld [vmem:[#allocation5 + $0x168] sm:$0xff]  ;;  %v1609_v19 = vcombine.low %v160_v11, %v164_v12  ;;  %v173_v5 = vld [vmem:[#allocation5 + $0x1f0] sm:$0xff]  ;;  %v1736_v12 = vmov 0  }
  0x22   :  { %817 = vmatprep.subr.bf16.mxu0 %v1608_v10  ;;  %914 = vmatprep.subr.bf16.mxu1 %v1610_v13  ;;  %v1600_v20 = vcombine.high %v151_v14, %v155_v15  ;;  %v1602_v21 = vcombine.high %v152_v16, %v156_v17  ;;  %v1771_v22 = vld [vmem:[#allocation2] sm:$0xff]  ;;  %v1775_v24 = vld [vmem:[#allocation2 + $0x8] sm:$0xff]  ;;  %v1599_v32 = vcombine.low %v151_v14, %v155_v15  ;;  %v174_v7 = vld [vmem:[#allocation5 + $0x1f8] sm:$0xff] }
  0x23   :  { %v1773_v23 = vld [vmem:[#allocation2 + $0x20] sm:$0xff]  ;;  %v1777_v25 = vld [vmem:[#allocation2 + $0x28] sm:$0xff]  ;;  %v1601_v33 = vcombine.low %v152_v16, %v156_v17  ;;  %v1620_v10 = vcombine.high %v169_v4, %v173_v5  ;;  %v1622_v11 = vcombine.high %v170_v6, %v174_v7  ;;  %1632 = vset.pattern.permute.xlu0 %v1736_v12  ;;  %1633 = vset.pattern.permute.xlu1 %v1736_v12  ;;  %v1280_v15 = vld [vmem:[%s1957_s2 + $0x10] sm:$0xff] }
  0x24   :  { %v1496_v26 = vcombine.high %v1771_v22, %v1773_v23  ;;  %v1498_v27 = vcombine.high %v1775_v24, %v1777_v25  ;;  %v143_v28 = vld [vmem:[#allocation5 + $0x100] sm:$0xff]  ;;  %v144_v30 = vld [vmem:[#allocation5 + $0x108] sm:$0xff]  ;;  %1307 = vperm.xlu1 %1633, %v1280_v15   ;;  %v137_v15 = vld [vmem:[#allocation5 + $0xd0] sm:$0xff] }
  0x25   :  { %v147_v29 = vld [vmem:[#allocation5 + $0x120] sm:$0xff]  ;;  %v148_v31 = vld [vmem:[#allocation5 + $0x128] sm:$0xff] }
  0x26   :  { %847 = vmatprep.mubr.bf16.mxu0 %v1496_v26  ;;  %944 = vmatprep.mubr.bf16.mxu1 %v1498_v27  ;;  %v1592_v34 = vcombine.high %v143_v28, %v147_v29  ;;  %v1594_v35 = vcombine.high %v144_v30, %v148_v31  ;;  %v135_v36 = vld [vmem:[#allocation5 + $0xc0] sm:$0xff]  ;;  %v136_v38 = vld [vmem:[#allocation5 + $0xc8] sm:$0xff]  ;;  %v1591_v40 = vcombine.low %v143_v28, %v147_v29  ;;  %v165_v26 = vld [vmem:[#allocation5 + $0x1b0] sm:$0xff] }
  0x27   :  { %v139_v37 = vld [vmem:[#allocation5 + $0xe0] sm:$0xff]  ;;  %v140_v39 = vld [vmem:[#allocation5 + $0xe8] sm:$0xff]  ;;  %v1593_v41 = vcombine.low %v144_v30, %v148_v31  ;;  %v1281_v27 = vld [vmem:[%s1957_s2 + $0x18] sm:$0xff]  ;;  %v1497_v28 = vcombine.low %v1775_v24, %v1777_v25  ;;  %v1619_v29 = vcombine.low %v169_v4, %v173_v5 }
  0x28   :  { %v1584_v42 = vcombine.high %v135_v36, %v139_v37  ;;  %v1586_v43 = vcombine.high %v136_v38, %v140_v39  ;;  %v127_v44 = vld [vmem:[#allocation5 + $0x80] sm:$0xff]  ;;  %v128_v46 = vld [vmem:[#allocation5 + $0x88] sm:$0xff]  ;;  %v1583_v48 = vcombine.low %v135_v36, %v139_v37  ;;  %v1585_v49 = vcombine.low %v136_v38, %v140_v39  ;;  %v162_v30 = vld [vmem:[#allocation5 + $0x198] sm:$0xff]  ;;  %1312 = vperm.xlu1 %1633, %v1281_v27  }
  0x29   :  { %818 = vmatpush1.bf16.xpose.msra.mxu0 %v1607_v18  ;;  %915 = vmatpush1.bf16.xpose.msra.mxu1 %v1609_v19  ;;  %v131_v45 = vld [vmem:[#allocation5 + $0xa0] sm:$0xff]  ;;  %v132_v47 = vld [vmem:[#allocation5 + $0xa8] sm:$0xff]  ;;  %v166_v31 = vld [vmem:[#allocation5 + $0x1b8] sm:$0xff] }
  0x2a   :  { %819 = vmatprep.subr.bf16.mxu0 %v1600_v20  ;;  %916 = vmatprep.subr.bf16.mxu1 %v1602_v21  ;;  %v1576_v50 = vcombine.high %v127_v44, %v131_v45  ;;  %v1578_v51 = vcombine.high %v128_v46, %v132_v47  ;;  %v119_v52 = vld [vmem:[#allocation5 + $0x40] sm:$0xff]  ;;  %v120_v54 = vld [vmem:[#allocation5 + $0x48] sm:$0xff]  ;;  %v1575_v56 = vcombine.low %v127_v44, %v131_v45  ;;  %v161_v21 = vld [vmem:[#allocation5 + $0x190] sm:$0xff] }
  0x2b   :  { %v123_v53 = vld [vmem:[#allocation5 + $0x60] sm:$0xff]  ;;  %v124_v55 = vld [vmem:[#allocation5 + $0x68] sm:$0xff]  ;;  %v1577_v57 = vcombine.low %v128_v46, %v132_v47  ;;  %v1495_v20 = vcombine.low %v1771_v22, %v1773_v23  ;;  %v1612_v23 = vcombine.high %v161_v21, %v165_v26  ;;  %v1284_v25 = vld [vmem:[%s1957_s2 + $0x30] sm:$0xff]  ;;  %v1611_v44 = vcombine.low %v161_v21, %v165_v26 }
  0x2c   :  { %v1568_v58 = vcombine.high %v119_v52, %v123_v53  ;;  %v1570_v59 = vcombine.high %v120_v54, %v124_v55  ;;  %v111_v60 = vld [vmem:[#allocation5] sm:$0xff]  ;;  %v112_v62 = vld [vmem:[#allocation5 + $0x8] sm:$0xff]  ;;  %v1567_v0 = vcombine.low %v119_v52, %v123_v53  ;;  %v1569_v1 = vcombine.low %v120_v54, %v124_v55  ;;  %v154_v45 = vld [vmem:[#allocation5 + $0x158] sm:$0xff] }
  0x2d   :  { %v115_v61 = vld [vmem:[#allocation5 + $0x20] sm:$0xff]  ;;  %v116_v63 = vld [vmem:[#allocation5 + $0x28] sm:$0xff]  ;;  %v158_v46 = vld [vmem:[#allocation5 + $0x178] sm:$0xff] }
  0x2e   :  { %v1560_v2 = vcombine.high %v111_v60, %v115_v61  ;;  %v1562_v3 = vcombine.high %v112_v62, %v116_v63  ;;  %v1559_v8 = vcombine.low %v111_v60, %v115_v61  ;;  %v1561_v9 = vcombine.low %v112_v62, %v116_v63  ;;  %v1278_v13 = vld [vmem:[%s1957_s2] sm:$0xff]  ;;  %v1279_v14 = vld [vmem:[%s1957_s2 + $0x8] sm:$0xff]  ;;  %v1285_v47 = vld [vmem:[%s1957_s2 + $0x38] sm:$0xff] }
  0x2f   :  { %1297 = vperm.xlu0 %1632, %v1278_v13   ;;  %v55_v16 = vld [vmem:[#allocation2 + $0x40] sm:$0xff]  ;;  %v56_v18 = vld [vmem:[#allocation2 + $0x48] sm:$0xff]  ;;  %v1606_v52 = vcombine.high %v154_v45, %v158_v46  ;;  %v145_v60 = vld [vmem:[#allocation5 + $0x110] sm:$0xff] }
  0x30   :  { %v59_v17 = vld [vmem:[#allocation2 + $0x60] sm:$0xff]  ;;  %v60_v19 = vld [vmem:[#allocation2 + $0x68] sm:$0xff]  ;;  %v149_v61 = vld [vmem:[#allocation5 + $0x130] sm:$0xff] }
  0x31   :  { %820 = vmatpush1.bf16.xpose.msra.mxu0 %v1599_v32  ;;  %917 = vmatpush1.bf16.xpose.msra.mxu1 %v1601_v33  ;;  %v1282_v32 = vld [vmem:[%s1957_s2 + $0x20] sm:$0xff]  ;;  %v1621_v33 = vcombine.low %v170_v6, %v174_v7  ;;  %v1506_v22 = vcombine.high %v56_v18, %v60_v19  ;;  %v1283_v24 = vld [vmem:[%s1957_s2 + $0x28] sm:$0xff]  ;;  %v1503_v39 = vcombine.low %v55_v16, %v59_v17 }
  0x32   :  { %821 = vmatprep.subr.bf16.mxu0 %v1592_v34  ;;  %918 = vmatprep.subr.bf16.mxu1 %v1594_v35  ;;  %v1504_v34 = vcombine.high %v55_v16, %v59_v17  ;;  %v1614_v35 = vcombine.high %v162_v30, %v166_v31  ;;  %v63_v36 = vld [vmem:[#allocation2 + $0x80] sm:$0xff]  ;;  %v64_v38 = vld [vmem:[#allocation2 + $0x88] sm:$0xff]  ;;  %v1596_v6 = vcombine.high %v145_v60, %v149_v61  ;;  %v141_v16 = vld [vmem:[#allocation5 + $0xf0] sm:$0xff] }
  0x33   :  { %1302 = vperm.xlu0 %1632, %v1279_v14   ;;  %v67_v37 = vld [vmem:[#allocation2 + $0xa0] sm:$0xff]  ;;  %1322 = vperm.xlu1 %1633, %v1283_v24   ;;  %v1287_v53 = vld [vmem:[%s1957_s2 + $0x48] sm:$0xff]  ;;  %v129_v24 = vld [vmem:[#allocation5 + $0x90] sm:$0xff] }
  0x34   :  { %v1286_v54 = vld [vmem:[%s1957_s2 + $0x40] sm:$0xff]  ;;  %v80_v12 = vld [vmem:[#allocation2 + $0x108] sm:$0xff] }
  0x35   :  { %v71_v55 = vld [vmem:[#allocation2 + $0xc0] sm:$0xff]  ;;  %v84_v14 = vld [vmem:[#allocation2 + $0x128] sm:$0xff] }
  0x36   :  { %v1290_v21 = vld [vmem:[%s1957_s2 + $0x60] sm:$0xff] }
  0x37   :  { %1317 = vperm.xlu0 %1632, %v1282_v32   ;;  %1332 = vperm.xlu1 %1633, %v1285_v47   ;;  %v1292_v32 = vld [vmem:[%s1957_s2 + $0x70] sm:$0xff]  ;;  %v96_v47 = vld [vmem:[#allocation2 + $0x188] sm:$0xff] }
  0x39   :  { %822 = vmatpush1.bf16.xpose.msra.mxu0 %v1591_v40  ;;  %919 = vmatpush1.bf16.xpose.msra.mxu1 %v1593_v41  ;;  %v68_v40 = vld [vmem:[#allocation2 + $0xa8] sm:$0xff]  ;;  %v153_v41 = vld [vmem:[#allocation5 + $0x150] sm:$0xff] }
  0x3a   :  { %823 = vmatprep.subr.bf16.mxu0 %v1584_v42  ;;  %920 = vmatprep.subr.bf16.mxu1 %v1586_v43  ;;  %v157_v42 = vld [vmem:[#allocation5 + $0x170] sm:$0xff]  ;;  %v1505_v43 = vcombine.low %v56_v18, %v60_v19  ;;  %v1513_v62 = vcombine.low %v64_v38, %v68_v40  ;;  %v1595_v18 = vcombine.low %v145_v60, %v149_v61  ;;  %v138_v19 = vld [vmem:[#allocation5 + $0xd8] sm:$0xff]  ;;  %v103_v61 = vld [vmem:[#allocation2 + $0x1c0] sm:$0xff] }
  0x3b   :  { %1327 = vperm.xlu0 %1632, %v1284_v25   ;;  %1342 = vperm.xlu1 %1633, %v1287_v53   ;;  %v1603_v63 = vcombine.low %v153_v41, %v157_v42  ;;  %v133_v25 = vld [vmem:[#allocation5 + $0xb0] sm:$0xff] }
  0x3c   :  { %v1579_v53 = vcombine.low %v129_v24, %v133_v25 }
  0x3f   :  { %1337 = vperm.xlu0 %1632, %v1286_v54   ;;  %v122_v54 = vld [vmem:[#allocation5 + $0x58] sm:$0xff] }
  0x41   :  { %824 = vmatpush1.bf16.xpose.msra.mxu0 %v1583_v48  ;;  %921 = vmatpush1.bf16.xpose.msra.mxu1 %v1585_v49  ;;  %v1613_v48 = vcombine.low %v162_v30, %v166_v31  ;;  %v1512_v49 = vcombine.high %v63_v36, %v67_v37  ;;  %v1293_v31 = vld [vmem:[%s1957_s2 + $0x78] sm:$0xff] }
  0x42   :  { %825 = vmatprep.subr.bf16.mxu0 %v1576_v50  ;;  %922 = vmatprep.subr.bf16.mxu1 %v1578_v51  ;;  %v1514_v50 = vcombine.high %v64_v38, %v68_v40  ;;  %v1604_v51 = vcombine.high %v153_v41, %v157_v42  ;;  %v130_v38 = vld [vmem:[#allocation5 + $0x98] sm:$0xff] }
  0x49   :  { %826 = vmatpush1.bf16.xpose.msra.mxu0 %v1575_v56  ;;  %923 = vmatpush1.bf16.xpose.msra.mxu1 %v1577_v57  ;;  %v75_v56 = vld [vmem:[#allocation2 + $0xe0] sm:$0xff]  ;;  %v72_v57 = vld [vmem:[#allocation2 + $0xc8] sm:$0xff] }
  0x4a   :  { %827 = vmatprep.subr.bf16.mxu0 %v1568_v58  ;;  %924 = vmatprep.subr.bf16.mxu1 %v1570_v59  ;;  %v1511_v58 = vcombine.low %v63_v36, %v67_v37  ;;  %v76_v59 = vld [vmem:[#allocation2 + $0xe8] sm:$0xff]  ;;  %v1520_v4 = vcombine.high %v71_v55, %v75_v56  ;;  %v1519_v13 = vcombine.low %v71_v55, %v75_v56  ;;  %v126_v55 = vld [vmem:[#allocation5 + $0x78] sm:$0xff] }
  0x4b   :  { %v1522_v5 = vcombine.high %v72_v57, %v76_v59  ;;  %v1521_v17 = vcombine.low %v72_v57, %v76_v59  ;;  %v1529_v36 = vcombine.low %v80_v12, %v84_v14  ;;  %v1587_v37 = vcombine.low %v137_v15, %v141_v16 }
  0x4c   :  { %v1574_v60 = vcombine.high %v122_v54, %v126_v55 }
  0x51   :  { %828 = vmatpush1.bf16.xpose.msra.mxu0 %v1567_v0  ;;  %925 = vmatpush1.bf16.xpose.msra.mxu1 %v1569_v1  ;;  %v146_v0 = vld [vmem:[#allocation5 + $0x118] sm:$0xff] }
  0x52   :  { %829 = vmatprep.subr.bf16.mxu0 %v1560_v2  ;;  %926 = vmatprep.subr.bf16.mxu1 %v1562_v3  ;;  %v150_v1 = vld [vmem:[#allocation5 + $0x138] sm:$0xff]  ;;  %v1605_v3 = vcombine.low %v154_v45, %v158_v46  ;;  %v95_v45 = vld [vmem:[#allocation2 + $0x180] sm:$0xff] }
  0x53   :  { %v1289_v2 = vld [vmem:[%s1957_s2 + $0x58] sm:$0xff]  ;;  %v1598_v7 = vcombine.high %v146_v0, %v150_v1  ;;  %v1597_v26 = vcombine.low %v146_v0, %v150_v1  ;;  %v99_v46 = vld [vmem:[#allocation2 + $0x1a0] sm:$0xff]  ;;  %v108_v1 = vld [vmem:[#allocation2 + $0x1e8] sm:$0xff] }
  0x54   :  { %1352 = vperm.xlu1 %1633, %v1289_v2   ;;  %v1544_v57 = vcombine.high %v95_v45, %v99_v46  ;;  %v1543_v0 = vcombine.low %v95_v45, %v99_v46  ;;  %v113_v2 = vld [vmem:[#allocation5 + $0x10] sm:$0xff] }
  0x59   :  { %830 = vmatpush1.bf16.xpose.msra.mxu0 %v1559_v8  ;;  %927 = vmatpush1.bf16.xpose.msra.mxu1 %v1561_v9  ;;  %v1288_v8 = vld [vmem:[%s1957_s2 + $0x50] sm:$0xff]  ;;  %v1291_v9 = vld [vmem:[%s1957_s2 + $0x68] sm:$0xff] }
  0x5a   :  { %1009 = vmatprep.subr.bf16.mxu0 %v1620_v10  ;;  %1106 = vmatprep.subr.bf16.mxu1 %v1622_v11  ;;  %v79_v10 = vld [vmem:[#allocation2 + $0x100] sm:$0xff] }
  0x5b   :  { %v83_v11 = vld [vmem:[#allocation2 + $0x120] sm:$0xff]  ;;  %1347 = vperm.xlu0 %1632, %v1288_v8   ;;  %1362 = vperm.xlu1 %1633, %v1291_v9   ;;  %v1573_v8 = vcombine.low %v122_v54, %v126_v55  ;;  %v89_v55 = vld [vmem:[#allocation2 + $0x150] sm:$0xff] }
  0x5c   :  { %v1528_v27 = vcombine.high %v79_v10, %v83_v11 }
  0x5f   :  { %1357 = vperm.xlu0 %1632, %v1290_v21   ;;  %1372 = vperm.xlu1 %1633, %v1293_v31  }
  0x60   :  { %848 = vmatmul.mubr.bf16.vlgmr.msra.gmra.mxu0 %v1495_v20  ;;  %945 = vmatmul.mubr.bf16.vlgmr.msra.gmra.mxu1 %v1497_v28  ;;  %v142_v20 = vld [vmem:[#allocation5 + $0xf8] sm:$0xff]  ;;  %v1530_v28 = vcombine.high %v80_v12, %v84_v14  ;;  %v53_v14 = vld [vmem:[#allocation2 + $0x30] sm:$0xff] }
  0x61   :  { %1010 = vmatpush1.bf16.xpose.msra.mxu0 %v1619_v29  ;;  %1107 = vmatpush1.bf16.xpose.msra.mxu1 %v1621_v33  ;;  %v1588_v29 = vcombine.high %v137_v15, %v141_v16  ;;  %v1590_v30 = vcombine.high %v138_v19, %v142_v20  ;;  %v87_v33 = vld [vmem:[#allocation2 + $0x140] sm:$0xff]  ;;  %v1589_v40 = vcombine.low %v138_v19, %v142_v20  ;;  %v50_v16 = vld [vmem:[#allocation2 + $0x18] sm:$0xff] }
  0x62   :  { %855 = vmatprep.mubr.bf16.mxu0 %v1504_v34  ;;  %952 = vmatprep.mubr.bf16.mxu1 %v1506_v22  ;;  %v91_v34 = vld [vmem:[#allocation2 + $0x160] sm:$0xff]  ;;  %v88_v22 = vld [vmem:[#allocation2 + $0x148] sm:$0xff] }
  0x63   :  { %1011 = vmatprep.subr.bf16.mxu0 %v1612_v23  ;;  %1108 = vmatprep.subr.bf16.mxu1 %v1614_v35  ;;  %v1527_v23 = vcombine.low %v79_v10, %v83_v11  ;;  %v92_v35 = vld [vmem:[#allocation2 + $0x168] sm:$0xff]  ;;  %v1536_v41 = vcombine.high %v87_v33, %v91_v34 }
  0x64   :  { %1367 = vperm.xlu0 %1632, %v1292_v32   ;;  %v1538_v42 = vcombine.high %v88_v22, %v92_v35 }
  0x68   :  { %856 = vmatmul.mubr.bf16.gmra.mxu0 %v1503_v39  ;;  %953 = vmatmul.mubr.bf16.gmra.mxu1 %v1505_v43  ;;  %v134_v39 = vld [vmem:[#allocation5 + $0xb8] sm:$0xff]  ;;  %v1580_v43 = vcombine.high %v129_v24, %v133_v25 }
  0x69   :  { %1012 = vmatpush1.bf16.xpose.msra.mxu0 %v1611_v44  ;;  %1109 = vmatpush1.bf16.xpose.msra.mxu1 %v1613_v48  ;;  %v1582_v44 = vcombine.high %v130_v38, %v134_v39  ;;  %v1535_v48 = vcombine.low %v87_v33, %v91_v34  ;;  %v1581_v56 = vcombine.low %v130_v38, %v134_v39  ;;  %v70_v24 = vld [vmem:[#allocation2 + $0xb8] sm:$0xff]  ;;  %v73_v39 = vld [vmem:[#allocation2 + $0xd0] sm:$0xff] }
  0x6a   :  { %863 = vmatprep.mubr.bf16.mxu0 %v1512_v49  ;;  %960 = vmatprep.mubr.bf16.mxu1 %v1514_v50  ;;  %v100_v49 = vld [vmem:[#allocation2 + $0x1a8] sm:$0xff]  ;;  %v121_v50 = vld [vmem:[#allocation5 + $0x50] sm:$0xff] }
  0x6b   :  { %1013 = vmatprep.subr.bf16.mxu0 %v1604_v51  ;;  %1110 = vmatprep.subr.bf16.mxu1 %v1606_v52  ;;  %v125_v51 = vld [vmem:[#allocation5 + $0x70] sm:$0xff]  ;;  %v1537_v52 = vcombine.low %v88_v22, %v92_v35  ;;  %v66_v35 = vld [vmem:[#allocation2 + $0x98] sm:$0xff] }
  0x6c   :  { %v1572_v59 = vcombine.high %v121_v50, %v125_v51  ;;  %v65_v22 = vld [vmem:[#allocation2 + $0x90] sm:$0xff]  ;;  %v1518_v38 = vcombine.high %v66_v35, %v70_v24 }
  0x70   :  { %864 = vmatmul.mubr.bf16.gmra.mxu0 %v1511_v58  ;;  %961 = vmatmul.mubr.bf16.gmra.mxu1 %v1513_v62  ;;  %v1546_v58 = vcombine.high %v96_v47, %v100_v49  ;;  %v107_v62 = vld [vmem:[#allocation2 + $0x1e0] sm:$0xff] }
  0x71   :  { %1014 = vmatpush1.bf16.xpose.msra.mxu0 %v1603_v63  ;;  %1111 = vmatpush1.bf16.xpose.msra.mxu1 %v1605_v3  ;;  %v104_v63 = vld [vmem:[#allocation2 + $0x1c8] sm:$0xff]  ;;  %v117_v3 = vld [vmem:[#allocation5 + $0x30] sm:$0xff]  ;;  %v1552_v9 = vcombine.high %v103_v61, %v107_v62  ;;  %v1551_v15 = vcombine.low %v103_v61, %v107_v62 }
  0x72   :  { %871 = vmatprep.mubr.bf16.mxu0 %v1520_v4  ;;  %968 = vmatprep.mubr.bf16.mxu1 %v1522_v5  ;;  %v1545_v4 = vcombine.low %v96_v47, %v100_v49  ;;  %v1571_v5 = vcombine.low %v121_v50, %v125_v51  ;;  %v1554_v10 = vcombine.high %v104_v63, %v108_v1  ;;  %v81_v47 = vld [vmem:[#allocation2 + $0x110] sm:$0xff]  ;;  %v82_v49 = vld [vmem:[#allocation2 + $0x118] sm:$0xff] }
  0x73   :  { %1015 = vmatprep.subr.bf16.mxu0 %v1596_v6  ;;  %1112 = vmatprep.subr.bf16.mxu1 %v1598_v7  ;;  %v114_v6 = vld [vmem:[#allocation5 + $0x18] sm:$0xff]  ;;  %v1564_v11 = vcombine.high %v113_v2, %v117_v3  ;;  %v1563_v19 = vcombine.low %v113_v2, %v117_v3 }
  0x74   :  { %v118_v7 = vld [vmem:[#allocation5 + $0x38] sm:$0xff] }
  0x75   :  { %v1566_v12 = vcombine.high %v114_v6, %v118_v7  ;;  %v1565_v20 = vcombine.low %v114_v6, %v118_v7  ;;  %v86_v50 = vld [vmem:[#allocation2 + $0x138] sm:$0xff]  ;;  %v105_v7 = vld [vmem:[#allocation2 + $0x1d0] sm:$0xff] }
  0x76   :  { %v1534_v54 = vcombine.high %v82_v49, %v86_v50  ;;  %v102_v2 = vld [vmem:[#allocation2 + $0x1b8] sm:$0xff] }
  0x78   :  { %872 = vmatmul.mubr.bf16.gmra.mxu0 %v1519_v13  ;;  %969 = vmatmul.mubr.bf16.gmra.mxu1 %v1521_v17  ;;  %v49_v13 = vld [vmem:[#allocation2 + $0x10] sm:$0xff]  ;;  %v54_v17 = vld [vmem:[#allocation2 + $0x38] sm:$0xff] }
  0x79   :  { %1016 = vmatpush1.bf16.xpose.msra.mxu0 %v1595_v18  ;;  %1113 = vmatpush1.bf16.xpose.msra.mxu1 %v1597_v26  ;;  %v1553_v18 = vcombine.low %v104_v63, %v108_v1  ;;  %v1500_v21 = vcombine.high %v49_v13, %v53_v14  ;;  %v1502_v26 = vcombine.high %v50_v16, %v54_v17  ;;  %v97_v63 = vld [vmem:[#allocation2 + $0x190] sm:$0xff]  ;;  %v98_v1 = vld [vmem:[#allocation2 + $0x198] sm:$0xff] }
  0x7a   :  { %879 = vmatprep.mubr.bf16.mxu0 %v1528_v27  ;;  %976 = vmatprep.mubr.bf16.mxu1 %v1530_v28  ;;  %v57_v27 = vld [vmem:[#allocation2 + $0x50] sm:$0xff]  ;;  %v1499_v31 = vcombine.low %v49_v13, %v53_v14  ;;  %v1501_v32 = vcombine.low %v50_v16, %v54_v17  ;;  %v1550_v6 = vcombine.high %v98_v1, %v102_v2 }
  0x7b   :  { %1017 = vmatprep.subr.bf16.mxu0 %v1588_v29  ;;  %1114 = vmatprep.subr.bf16.mxu1 %v1590_v30  ;;  %v61_v28 = vld [vmem:[#allocation2 + $0x70] sm:$0xff]  ;;  %v58_v29 = vld [vmem:[#allocation2 + $0x58] sm:$0xff] }
  0x7c   :  { %v62_v30 = vld [vmem:[#allocation2 + $0x78] sm:$0xff]  ;;  %v1508_v33 = vcombine.high %v57_v27, %v61_v28  ;;  %v1507_v25 = vcombine.low %v57_v27, %v61_v28 }
  0x7d   :  { %v1510_v34 = vcombine.high %v58_v29, %v62_v30 }
  0x80   :  { %880 = vmatmul.mubr.bf16.gmra.mxu0 %v1527_v23  ;;  %977 = vmatmul.mubr.bf16.gmra.mxu1 %v1529_v36  ;;  %v69_v23 = vld [vmem:[#allocation2 + $0xb0] sm:$0xff]  ;;  %v1509_v36 = vcombine.low %v58_v29, %v62_v30 }
  0x81   :  { %1018 = vmatpush1.bf16.xpose.msra.mxu0 %v1587_v37  ;;  %1115 = vmatpush1.bf16.xpose.msra.mxu1 %v1589_v40  ;;  %v1516_v37 = vcombine.high %v65_v22, %v69_v23  ;;  %v77_v40 = vld [vmem:[#allocation2 + $0xf0] sm:$0xff] }
  0x82   :  { %887 = vmatprep.mubr.bf16.mxu0 %v1536_v41  ;;  %984 = vmatprep.mubr.bf16.mxu1 %v1538_v42  ;;  %v74_v41 = vld [vmem:[#allocation2 + $0xd8] sm:$0xff]  ;;  %v1524_v45 = vcombine.high %v73_v39, %v77_v40  ;;  %v1523_v51 = vcombine.low %v73_v39, %v77_v40 }
  0x83   :  { %1019 = vmatprep.subr.bf16.mxu0 %v1580_v43  ;;  %1116 = vmatprep.subr.bf16.mxu1 %v1582_v44  ;;  %v78_v42 = vld [vmem:[#allocation2 + $0xf8] sm:$0xff]  ;;  %v1515_v43 = vcombine.low %v65_v22, %v69_v23  ;;  %v1517_v44 = vcombine.low %v66_v35, %v70_v24 }
  0x84   :  { %v1526_v46 = vcombine.high %v74_v41, %v78_v42 }
  0x88   :  { %888 = vmatmul.mubr.bf16.gmra.mxu0 %v1535_v48  ;;  %985 = vmatmul.mubr.bf16.gmra.mxu1 %v1537_v52  ;;  %v85_v48 = vld [vmem:[#allocation2 + $0x130] sm:$0xff]  ;;  %v1525_v52 = vcombine.low %v74_v41, %v78_v42 }
  0x89   :  { %1020 = vmatpush1.bf16.xpose.msra.mxu0 %v1579_v53  ;;  %1117 = vmatpush1.bf16.xpose.msra.mxu1 %v1581_v56  ;;  %v1532_v53 = vcombine.high %v81_v47, %v85_v48  ;;  %v93_v56 = vld [vmem:[#allocation2 + $0x170] sm:$0xff] }
  0x8a   :  { %895 = vmatprep.mubr.bf16.mxu0 %v1544_v57  ;;  %992 = vmatprep.mubr.bf16.mxu1 %v1546_v58  ;;  %v90_v57 = vld [vmem:[#allocation2 + $0x158] sm:$0xff]  ;;  %v1540_v61 = vcombine.high %v89_v55, %v93_v56  ;;  %v1539_v3 = vcombine.low %v89_v55, %v93_v56 }
  0x8b   :  { %1021 = vmatprep.subr.bf16.mxu0 %v1572_v59  ;;  %1118 = vmatprep.subr.bf16.mxu1 %v1574_v60  ;;  %v94_v58 = vld [vmem:[#allocation2 + $0x178] sm:$0xff]  ;;  %v1531_v59 = vcombine.low %v81_v47, %v85_v48  ;;  %v1533_v60 = vcombine.low %v82_v49, %v86_v50 }
  0x8c   :  { %v1542_v62 = vcombine.high %v90_v57, %v94_v58 }
  0x90   :  { %896 = vmatmul.mubr.bf16.gmra.mxu0 %v1543_v0  ;;  %993 = vmatmul.mubr.bf16.gmra.mxu1 %v1545_v4  ;;  %v101_v0 = vld [vmem:[#allocation2 + $0x1b0] sm:$0xff]  ;;  %v1541_v4 = vcombine.low %v90_v57, %v94_v58 }
  0x91   :  { %1022 = vmatpush1.bf16.xpose.msra.mxu0 %v1571_v5  ;;  %1119 = vmatpush1.bf16.xpose.msra.mxu1 %v1573_v8  ;;  %v1548_v5 = vcombine.high %v97_v63, %v101_v0  ;;  %v109_v8 = vld [vmem:[#allocation2 + $0x1f0] sm:$0xff] }
  0x92   :  { %903 = vmatprep.mubr.bf16.mxu0 %v1552_v9  ;;  %1000 = vmatprep.mubr.bf16.mxu1 %v1554_v10  ;;  %v106_v9 = vld [vmem:[#allocation2 + $0x1d8] sm:$0xff]  ;;  %v1556_v13 = vcombine.high %v105_v7, %v109_v8 }
  0x93   :  { %1023 = vmatprep.subr.bf16.mxu0 %v1564_v11  ;;  %1120 = vmatprep.subr.bf16.mxu1 %v1566_v12  ;;  %v110_v10 = vld [vmem:[#allocation2 + $0x1f8] sm:$0xff]  ;;  %v1547_v11 = vcombine.low %v97_v63, %v101_v0  ;;  %v1549_v12 = vcombine.low %v98_v1, %v102_v2 }
  0x94   :  { %v1558_v14 = vcombine.high %v106_v9, %v110_v10  ;;  %v1557_v16 = vcombine.low %v106_v9, %v110_v10 }
  0x98   :  { %904 = vmatmul.mubr.bf16.gmra.mxu0 %v1551_v15  ;;  %1001 = vmatmul.mubr.bf16.gmra.mxu1 %v1553_v18  ;;  %v1555_v15 = vcombine.low %v105_v7, %v109_v8 }
  0x99   :  { %1024 = vmatpush1.bf16.xpose.msra.mxu0 %v1563_v19  ;;  %1121 = vmatpush1.bf16.xpose.msra.mxu1 %v1565_v20 }
  0x9a   :  { %1041 = vmatprep.mubr.bf16.mxu0 %v1500_v21  ;;  %1138 = vmatprep.mubr.bf16.mxu1 %v1502_v26 }
  0x9f   :  { %v1308_v10 = vpop.permute.xlu1 %1307 }
  0xa0   :  { %1042 = vmatmul.mubr.bf16.vlgmr.msra.gmra.mxu0 %v1499_v31  ;;  %1139 = vmatmul.mubr.bf16.vlgmr.msra.gmra.mxu1 %v1501_v32 }
  0xa1   :  { %1049 = vmatprep.mubr.bf16.mxu0 %v1508_v33  ;;  %1146 = vmatprep.mubr.bf16.mxu1 %v1510_v34 }
  0xa8   :  { %1050 = vmatmul.mubr.bf16.gmra.mxu0 %v1507_v25  ;;  %1147 = vmatmul.mubr.bf16.gmra.mxu1 %v1509_v36 }
  0xa9   :  { %1057 = vmatprep.mubr.bf16.mxu0 %v1516_v37  ;;  %1154 = vmatprep.mubr.bf16.mxu1 %v1518_v38 }
  0xaa   :  { %v1298_v58 = vpop.permute.xlu0 %1297 }
  0xb0   :  { %1058 = vmatmul.mubr.bf16.gmra.mxu0 %v1515_v43  ;;  %1155 = vmatmul.mubr.bf16.gmra.mxu1 %v1517_v44 }
  0xb1   :  { %1065 = vmatprep.mubr.bf16.mxu0 %v1524_v45  ;;  %1162 = vmatprep.mubr.bf16.mxu1 %v1526_v46 }
  0xb8   :  { %1066 = vmatmul.mubr.bf16.gmra.mxu0 %v1523_v51  ;;  %1163 = vmatmul.mubr.bf16.gmra.mxu1 %v1525_v52 }
  0xb9   :  { %1073 = vmatprep.mubr.bf16.mxu0 %v1532_v53  ;;  %1170 = vmatprep.mubr.bf16.mxu1 %v1534_v54 }
  0xc0   :  { %1074 = vmatmul.mubr.bf16.gmra.mxu0 %v1531_v59  ;;  %1171 = vmatmul.mubr.bf16.gmra.mxu1 %v1533_v60 }
  0xc1   :  { %1081 = vmatprep.mubr.bf16.mxu0 %v1540_v61  ;;  %1178 = vmatprep.mubr.bf16.mxu1 %v1542_v62  ;;  %v1882_v61 = vld [vmem:[%s1958_s3] ss:$0 sm:$0xff]  ;;  %s1737_s3 = smov [#allocation7]  }
  0xc2   :  { %v1381_v1 = vmul.f32 %v1882_v61, %v1298_v58  ;;  %s1482_s30 = sshll.u32 %s1737_s3, 4  ;;  %s1483_s30 = int_to_ptr.vmem [resolvable:$true] %s1482_s30 }
  0xc3   :  { %s1706_s5 = scalar_lea.vmem %s1483_s30, 2048  ;;  %p1711_p11 = scmp.lt.s32.totalorder %s1483_s30, %s1483_s30 }
  0xc4   :  { %v1397_v7 = vmax.f32 %v1381_v1, 1e-08  ;;  %p1707_p10 = scmp.ne.s32.totalorder %s1483_s30, %s1706_s5  ;;  %p1712_p12 = scmp.lt.s32.totalorder %s1706_s5, %s1706_s5 }
  0xc6   :  { %1634 = vrcp.f32 %v1397_v7  ;;  %p1713_p13 = por %p1712_p12, %p1711_p11 }
  0xc8   :  { %1082 = vmatmul.mubr.bf16.gmra.mxu0 %v1539_v3  ;;  %1179 = vmatmul.mubr.bf16.gmra.mxu1 %v1541_v4  ;;  %v1303_v3 = vpop.permute.xlu0 %1302  ;;  %p1714_p0 = pnand %p1713_p13, %p1707_p10 }
  0xc9   :  { %1089 = vmatprep.mubr.bf16.mxu0 %v1548_v5  ;;  %1186 = vmatprep.mubr.bf16.mxu1 %v1550_v6  ;;  %v1382_v8 = vmul.f32 %v1882_v61, %v1303_v3 }
  0xd0   :  { %1090 = vmatmul.mubr.bf16.gmra.mxu0 %v1547_v11  ;;  %1187 = vmatmul.mubr.bf16.gmra.mxu1 %v1549_v12 }
  0xd1   :  { %1097 = vmatprep.mubr.bf16.mxu0 %v1556_v13  ;;  %1194 = vmatprep.mubr.bf16.mxu1 %v1558_v14  ;;  %v1398_v14 = vmax.f32 %v1382_v8, 1e-08 }
  0xd3   :  { %1636 = vrcp.f32 %v1398_v14 }
  0xd8   :  { %1098 = vmatmul.mubr.bf16.gmra.mxu0 %v1555_v15  ;;  %1195 = vmatmul.mubr.bf16.gmra.mxu1 %v1557_v16  ;;  %v1383_v15 = vmul.f32 %v1882_v61, %v1308_v10 }
 0x120   :  { %v1835_v17 = vpop.f32.mrf.mxu0  ;;  %v1837_v18 = vpop.f32.mrf.mxu1 }
 0x122   :  { %v851_v19 = vpop.f32.mrf.mxu0  ;;  %v948_v20 = vpop.f32.mrf.mxu1 }
 0x124   :  { %v1839_v21 = vpop.f32.mrf.mxu0  ;;  %v1841_v26 = vpop.f32.mrf.mxu1 }
 0x126   :  { %v854_v27 = vpop.f32.mrf.mxu0  ;;  %v951_v28 = vpop.f32.mrf.mxu1 }
 0x127   :  { %v1313_v27 = vpop.permute.xlu1 %1312 }
 0x128   :  { %v1843_v29 = vpop.f32.mrf.mxu0  ;;  %v1845_v30 = vpop.f32.mrf.mxu1 }
 0x12a   :  { %v859_v31 = vpop.f32.mrf.mxu0  ;;  %v956_v32 = vpop.f32.mrf.mxu1 }
 0x12b   :  { %v1399_v31 = vmax.f32 %v1383_v15, 1e-08  ;;  %v1384_v32 = vmul.f32 %v1882_v61, %v1313_v27 }
 0x12c   :  { %v1847_v33 = vpop.f32.mrf.mxu0  ;;  %v1849_v34 = vpop.f32.mrf.mxu1 }
 0x12d   :  { %1638 = vrcp.f32 %v1399_v31 }
 0x12e   :  { %v862_v22 = vpop.f32.mrf.mxu0  ;;  %v959_v23 = vpop.f32.mrf.mxu1 }
 0x130   :  { %v1851_v35 = vpop.f32.mrf.mxu0  ;;  %v1853_v24 = vpop.f32.mrf.mxu1 }
 0x132   :  { %v867_v25 = vpop.f32.mrf.mxu0  ;;  %v964_v36 = vpop.f32.mrf.mxu1 }
 0x133   :  { %v1318_v36 = vpop.permute.xlu0 %1317 }
 0x134   :  { %v1855_v37 = vpop.f32.mrf.mxu0  ;;  %v1857_v38 = vpop.f32.mrf.mxu1 }
 0x136   :  { %v870_v39 = vpop.f32.mrf.mxu0  ;;  %v967_v40 = vpop.f32.mrf.mxu1 }
 0x137   :  { %v1400_v40 = vmax.f32 %v1384_v32, 1e-08  ;;  %v1328_v7 = vpop.permute.xlu0 %1327 }
 0x138   :  { %v1859_v41 = vpop.f32.mrf.mxu0  ;;  %v1861_v42 = vpop.f32.mrf.mxu1 }
 0x139   :  { %1640 = vrcp.f32 %v1400_v40 }
 0x13a   :  { %v875_v43 = vpop.f32.mrf.mxu0  ;;  %v972_v44 = vpop.f32.mrf.mxu1 }
 0x13b   :  { %v1385_v43 = vmul.f32 %v1882_v61, %v1318_v36 }
 0x13c   :  { %v1863_v45 = vpop.f32.mrf.mxu0  ;;  %v1865_v46 = vpop.f32.mrf.mxu1 }
 0x13e   :  { %v878_v47 = vpop.f32.mrf.mxu0  ;;  %v975_v48 = vpop.f32.mrf.mxu1 }
 0x13f   :  { %v947_v47 = vadd.f32 %v1837_v18, %v1835_v17  ;;  %v1387_v17 = vmul.f32 %v1882_v61, %v1328_v7 }
 0x140   :  { %v1867_v49 = vpop.f32.mrf.mxu0  ;;  %v1869_v50 = vpop.f32.mrf.mxu1 }
 0x141   :  { %v1403_v31 = vmax.f32 %v1387_v17, 1e-08 }
 0x142   :  { %v883_v51 = vpop.f32.mrf.mxu0  ;;  %v980_v52 = vpop.f32.mrf.mxu1 }
 0x143   :  { %v1323_v52 = vpop.permute.xlu1 %1322 }
 0x144   :  { %v1871_v53 = vpop.f32.mrf.mxu0  ;;  %v1873_v54 = vpop.f32.mrf.mxu1  ;;  %v1386_v58 = vmul.f32 %v1882_v61, %v1323_v52 }
 0x146   :  { %v886_v55 = vpop.f32.mrf.mxu0  ;;  %v983_v56 = vpop.f32.mrf.mxu1 }
 0x148   :  { %v1875_v57 = vpop.f32.mrf.mxu0  ;;  %v1877_v59 = vpop.f32.mrf.mxu1 }
 0x14a   :  { %v891_v60 = vpop.f32.mrf.mxu0  ;;  %v988_v62 = vpop.f32.mrf.mxu1 }
 0x14b   :  { %v1401_v60 = vmax.f32 %v1385_v43, 1e-08  ;;  %v1635_v62 = vpop.eup %1634 }
 0x14c   :  { %v1884_v63 = vpop.f32.mrf.mxu0  ;;  %v1886_v0 = vpop.f32.mrf.mxu1 }
 0x14d   :  { %1642 = vrcp.f32 %v1401_v60  ;;  %v1637_v14 = vpop.eup %1636 }
 0x14e   :  { %v894_v2 = vpop.f32.mrf.mxu0  ;;  %v991_v4 = vpop.f32.mrf.mxu1 }
 0x14f   :  { %v950_v2 = vadd.f32 %v1841_v26, %v1839_v21  ;;  %v1333_v26 = vpop.permute.xlu1 %1332  ;;  %v1639_v40 = vpop.eup %1638 }
 0x150   :  { %v1889_v5 = vpop.f32.mrf.mxu0  ;;  %v1891_v6 = vpop.f32.mrf.mxu1  ;;  %v1388_v36 = vmul.f32 %v1882_v61, %v1333_v26 }
 0x151   :  { %v1641_v60 = vpop.eup %1640 }
 0x152   :  { %v899_v9 = vpop.f32.mrf.mxu0  ;;  %v996_v11 = vpop.f32.mrf.mxu1  ;;  %v1404_v52 = vmax.f32 %v1388_v36, 1e-08 }
 0x153   :  { %v1402_v11 = vmax.f32 %v1386_v58, 1e-08 }
 0x154   :  { %v1894_v12 = vpop.f32.mrf.mxu0  ;;  %v1896_v13 = vpop.f32.mrf.mxu1 }
 0x155   :  { %1644 = vrcp.f32 %v1402_v11 }
 0x156   :  { %v902_v16 = vpop.f32.mrf.mxu0  ;;  %v999_v19 = vpop.f32.mrf.mxu1  ;;  %1646 = vrcp.f32 %v1403_v31  ;;  %v971_v31 = vadd.f32 %v1861_v42, %v1859_v41 }
 0x157   :  { %v955_v16 = vadd.f32 %v1845_v30, %v1843_v29  ;;  %1648 = vrcp.f32 %v1404_v52 }
 0x158   :  { %v1899_v20 = vpop.f32.mrf.mxu0  ;;  %v1901_v28 = vpop.f32.mrf.mxu1 }
 0x15a   :  { %v907_v22 = vpop.f32.mrf.mxu0  ;;  %v1004_v23 = vpop.f32.mrf.mxu1 }
 0x15b   :  { %v1643_v17 = vpop.eup %1642 }
 0x15c   :  { %v1904_v25 = vpop.f32.mrf.mxu0  ;;  %v1906_v39 = vpop.f32.mrf.mxu1 }
 0x15e   :  { %v910_v44 = vpop.f32.mrf.mxu0  ;;  %v1007_v48 = vpop.f32.mrf.mxu1 }
 0x15f   :  { %v958_v44 = vadd.f32 %v1849_v34, %v1847_v33  ;;  %v1338_v48 = vpop.permute.xlu0 %1337 }
 0x160   :  { %v1043_v51 = vpop.f32.mrf.mxu0  ;;  %v1140_v56 = vpop.f32.mrf.mxu1  ;;  %v1389_v58 = vmul.f32 %v1882_v61, %v1338_v48  ;;  %v974_v48 = vadd.f32 %v1865_v46, %v1863_v45 }
 0x161   :  { %v1044_v55 = vadd.f32 %v1043_v51, %v947_v47 }
 0x162   :  { %v1045_v1 = vpop.f32.mrf.mxu0  ;;  %v1142_v4 = vpop.f32.mrf.mxu1 }
 0x163   :  { %v1141_v3 = vadd.f32 %v1140_v56, %v1044_v55  ;;  %v963_v1 = vadd.f32 %v1853_v24, %v1851_v35  ;;  %v1405_v4 = vmax.f32 %v1389_v58, 1e-08 }
 0x164   :  { %v1046_v8 = vpop.f32.mrf.mxu0  ;;  %v1143_v10 = vpop.f32.mrf.mxu1 }
 0x165   :  { %v1445_v18 = vmul.f32 %v1635_v62, %v1141_v3  ;;  %v1047_v9 = vadd.f32 %v1046_v8, %v950_v2  ;;  %1650 = vrcp.f32 %v1405_v4 }
 0x166   :  { %v1048_v15 = vpop.f32.mrf.mxu0  ;;  %v1145_v27 = vpop.f32.mrf.mxu1 }
 0x167   :  { %1461 = vst [vmem:[#allocation7] sm:$0xff] %v1445_v18  ;;  %v1144_v19 = vadd.f32 %v1143_v10, %v1047_v9  ;;  %v1343_v18 = vpop.permute.xlu1 %1342  ;;  %v966_v10 = vadd.f32 %v1857_v38, %v1855_v37  ;;  %v1645_v27 = vpop.eup %1644 }
 0x168   :  { %v1051_v21 = vpop.f32.mrf.mxu0  ;;  %v1148_v23 = vpop.f32.mrf.mxu1  ;;  %v1390_v11 = vmul.f32 %v1882_v61, %v1343_v18 }
 0x169   :  { %v1446_v32 = vmul.f32 %v1637_v14, %v1144_v19  ;;  %v1052_v22 = vadd.f32 %v1051_v21, %v955_v16  ;;  %v1348_v21 = vpop.permute.xlu0 %1347  ;;  %v1647_v36 = vpop.eup %1646 }
 0x16a   :  { %v1053_v43 = vpop.f32.mrf.mxu0  ;;  %v1150_v29 = vpop.f32.mrf.mxu1  ;;  %v1391_v37 = vmul.f32 %v1882_v61, %v1348_v21 }
 0x16b   :  { %1462 = vst [vmem:[#allocation7 + $0x8] sm:$0xff] %v1446_v32  ;;  %v1149_v47 = vadd.f32 %v1148_v23, %v1052_v22  ;;  %v1406_v32 = vmax.f32 %v1390_v11, 1e-08  ;;  %v982_v11 = vadd.f32 %v1873_v54, %v1871_v53 }
 0x16c   :  { %v1054_v30 = vpop.f32.mrf.mxu0  ;;  %v1151_v56 = vpop.f32.mrf.mxu1  ;;  %v1407_v41 = vmax.f32 %v1391_v37, 1e-08 }
 0x16d   :  { %v1447_v51 = vmul.f32 %v1639_v40, %v1149_v47  ;;  %v1055_v55 = vadd.f32 %v1054_v30, %v958_v44  ;;  %v1353_v40 = vpop.permute.xlu1 %1352  ;;  %1652 = vrcp.f32 %v1406_v32 }
 0x16e   :  { %v1056_v62 = vpop.f32.mrf.mxu0  ;;  %v1153_v33 = vpop.f32.mrf.mxu1  ;;  %v1392_v29 = vmul.f32 %v1882_v61, %v1353_v40  ;;  %1654 = vrcp.f32 %v1407_v41 }
 0x16f   :  { %1463 = vst [vmem:[#allocation7 + $0x10] sm:$0xff] %v1447_v51  ;;  %v1152_v2 = vadd.f32 %v1151_v56, %v1055_v55  ;;  %v1358_v55 = vpop.permute.xlu0 %1357  ;;  %v1649_v62 = vpop.eup %1648  ;;  %v979_v33 = vadd.f32 %v1869_v50, %v1867_v49 }
 0x170   :  { %v1059_v34 = vpop.f32.mrf.mxu0  ;;  %v1156_v8 = vpop.f32.mrf.mxu1 }
 0x171   :  { %v1448_v3 = vmul.f32 %v1641_v60, %v1152_v2  ;;  %v1060_v7 = vadd.f32 %v1059_v34, %v963_v1  ;;  %v1393_v1 = vmul.f32 %v1882_v61, %v1358_v55  ;;  %v1408_v34 = vmax.f32 %v1392_v29, 1e-08  ;;  %v1363_v4 = vpop.permute.xlu1 %1362 }
 0x172   :  { %v1061_v9 = vpop.f32.mrf.mxu0  ;;  %v1158_v35 = vpop.f32.mrf.mxu1 }
 0x173   :  { %1464 = vst [vmem:[#allocation7 + $0x18] sm:$0xff] %v1448_v3  ;;  %v1157_v14 = vadd.f32 %v1156_v8, %v1060_v7  ;;  %v1651_v18 = vpop.eup %1650  ;;  %v1394_v9 = vmul.f32 %v1882_v61, %v1363_v4  ;;  %1656 = vrcp.f32 %v1408_v34  ;;  %v1368_v35 = vpop.permute.xlu0 %1367 }
 0x174   :  { %v1062_v24 = vpop.f32.mrf.mxu0  ;;  %v1159_v19 = vpop.f32.mrf.mxu1  ;;  %v1395_v32 = vmul.f32 %v1882_v61, %v1368_v35 }
 0x175   :  { %v1449_v15 = vmul.f32 %v1643_v17, %v1157_v14  ;;  %v1063_v16 = vadd.f32 %v1062_v24, %v966_v10  ;;  %v1409_v14 = vmax.f32 %v1393_v1, 1e-08 }
 0x176   :  { %v1064_v26 = vpop.f32.mrf.mxu0  ;;  %v1161_v22 = vpop.f32.mrf.mxu1 }
 0x177   :  { %1465 = vst [vmem:[#allocation7 + $0x20] sm:$0xff] %v1449_v15  ;;  %v1160_v38 = vadd.f32 %v1159_v19, %v1063_v16  ;;  %v987_v26 = vadd.f32 %v1877_v59, %v1875_v57  ;;  %1658 = vrcp.f32 %v1409_v14  ;;  %v1411_v57 = vmax.f32 %v1395_v32, 1e-08 }
 0x178   :  { %v1067_v23 = vpop.f32.mrf.mxu0  ;;  %v1164_v47 = vpop.f32.mrf.mxu1  ;;  %v1006_v14 = vadd.f32 %v1906_v39, %v1904_v25 }
 0x179   :  { %v1450_v43 = vmul.f32 %v1645_v27, %v1160_v38  ;;  %v1068_v44 = vadd.f32 %v1067_v23, %v971_v31  ;;  %v1410_v27 = vmax.f32 %v1394_v9, 1e-08  ;;  %v1373_v31 = vpop.permute.xlu1 %1372 }
 0x17a   :  { %v1069_v30 = vpop.f32.mrf.mxu0  ;;  %v1166_v51 = vpop.f32.mrf.mxu1  ;;  %v1396_v40 = vmul.f32 %v1882_v61, %v1373_v31 }
 0x17b   :  { %1466 = vst [vmem:[#allocation7 + $0x28] sm:$0xff] %v1450_v43  ;;  %v1165_v42 = vadd.f32 %v1164_v47, %v1068_v44  ;;  %v1653_v37 = vpop.eup %1652  ;;  %v990_v44 = vadd.f32 %v1886_v0, %v1884_v63  ;;  %1660 = vrcp.f32 %v1410_v27 }
 0x17c   :  { %v1070_v52 = vpop.f32.mrf.mxu0  ;;  %v1167_v60 = vpop.f32.mrf.mxu1  ;;  %v1412_v55 = vmax.f32 %v1396_v40, 1e-08  ;;  %1662 = vrcp.f32 %v1411_v57 }
 0x17d   :  { %v1451_v56 = vmul.f32 %v1647_v36, %v1165_v42  ;;  %v1071_v58 = vadd.f32 %v1070_v52, %v974_v48  ;;  %v1655_v29 = vpop.eup %1654  ;;  %v995_v52 = vadd.f32 %v1891_v6, %v1889_v5 }
 0x17e   :  { %v1072_v2 = vpop.f32.mrf.mxu0  ;;  %v1169_v46 = vpop.f32.mrf.mxu1  ;;  %1664 = vrcp.f32 %v1412_v55 }
 0x17f   :  { %1467 = vst [vmem:[#allocation7 + $0x30] sm:$0xff] %v1451_v56  ;;  %v1168_v45 = vadd.f32 %v1167_v60, %v1071_v58  ;;  %v998_v2 = vadd.f32 %v1896_v13, %v1894_v12 }
 0x180   :  { %v1075_v3 = vpop.f32.mrf.mxu0  ;;  %v1172_v17 = vpop.f32.mrf.mxu1 }
 0x181   :  { %v1452_v7 = vmul.f32 %v1649_v62, %v1168_v45  ;;  %v1076_v8 = vadd.f32 %v1075_v3, %v979_v33  ;;  %v1657_v63 = vpop.eup %1656 }
 0x182   :  { %v1077_v10 = vpop.f32.mrf.mxu0  ;;  %v1174_v50 = vpop.f32.mrf.mxu1 }
 0x183   :  { %1468 = vst [vmem:[#allocation7 + $0x38] sm:$0xff] %v1452_v7  ;;  %v1173_v49 = vadd.f32 %v1172_v17, %v1076_v8  ;;  %v1003_v7 = vadd.f32 %v1901_v28, %v1899_v20 }
 0x184   :  { %v1078_v24 = vpop.f32.mrf.mxu0  ;;  %v1175_v19 = vpop.f32.mrf.mxu1 }
 0x185   :  { %v1453_v15 = vmul.f32 %v1651_v18, %v1173_v49  ;;  %v1079_v16 = vadd.f32 %v1078_v24, %v982_v11  ;;  %v1659_v45 = vpop.eup %1658 }
 0x186   :  { %v1080_v21 = vpop.f32.mrf.mxu0  ;;  %v1177_v54 = vpop.f32.mrf.mxu1 }
 0x187   :  { %1469 = vst [vmem:[#allocation7 + $0x40] sm:$0xff] %v1453_v15  ;;  %v1176_v53 = vadd.f32 %v1175_v19, %v1079_v16 }
 0x188   :  { %v1083_v38 = vpop.f32.mrf.mxu0  ;;  %v1180_v36 = vpop.f32.mrf.mxu1 }
 0x189   :  { %v1454_v22 = vmul.f32 %v1653_v37, %v1176_v53  ;;  %v1084_v23 = vadd.f32 %v1083_v38, %v987_v26  ;;  %v1661_v18 = vpop.eup %1660 }
 0x18a   :  { %v1085_v43 = vpop.f32.mrf.mxu0  ;;  %v1182_v47 = vpop.f32.mrf.mxu1 }
 0x18b   :  { %1470 = vst [vmem:[#allocation7 + $0x48] sm:$0xff] %v1454_v22  ;;  %v1181_v59 = vadd.f32 %v1180_v36, %v1084_v23  ;;  %v1663_v35 = vpop.eup %1662 }
 0x18c   :  { %v1086_v30 = vpop.f32.mrf.mxu0  ;;  %v1183_v42 = vpop.f32.mrf.mxu1 }
 0x18d   :  { %v1455_v48 = vmul.f32 %v1655_v29, %v1181_v59  ;;  %v1087_v41 = vadd.f32 %v1086_v30, %v990_v44  ;;  %v1665_v21 = vpop.eup %1664 }
 0x18e   :  { %v1088_v51 = vpop.f32.mrf.mxu0  ;;  %v1185_v56 = vpop.f32.mrf.mxu1 }
 0x18f   :  { %1471 = vst [vmem:[#allocation7 + $0x50] sm:$0xff] %v1455_v48  ;;  %v1184_v61 = vadd.f32 %v1183_v42, %v1087_v41 }
 0x190   :  { %v1091_v0 = vpop.f32.mrf.mxu0  ;;  %v1188_v62 = vpop.f32.mrf.mxu1 }
 0x191   :  { %v1456_v58 = vmul.f32 %v1657_v63, %v1184_v61  ;;  %v1092_v60 = vadd.f32 %v1091_v0, %v995_v52 }
 0x192   :  { %v1093_v1 = vpop.f32.mrf.mxu0  ;;  %v1190_v34 = vpop.f32.mrf.mxu1 }
 0x193   :  { %1472 = vst [vmem:[#allocation7 + $0x58] sm:$0xff] %v1456_v58  ;;  %v1189_v33 = vadd.f32 %v1188_v62, %v1092_v60 }
 0x194   :  { %v1094_v5 = vpop.f32.mrf.mxu0  ;;  %v1191_v3 = vpop.f32.mrf.mxu1 }
 0x195   :  { %v1457_v6 = vmul.f32 %v1659_v45, %v1189_v33  ;;  %v1095_v46 = vadd.f32 %v1094_v5, %v998_v2 }
 0x196   :  { %v1096_v4 = vpop.f32.mrf.mxu0  ;;  %v1193_v17 = vpop.f32.mrf.mxu1 }
 0x197   :  { %1473 = vst [vmem:[#allocation7 + $0x60] sm:$0xff] %v1457_v6  ;;  %v1192_v8 = vadd.f32 %v1191_v3, %v1095_v46 }
 0x198   :  { %v1099_v9 = vpop.f32.mrf.mxu0  ;;  %v1196_v13 = vpop.f32.mrf.mxu1 }
 0x199   :  { %v1458_v10 = vmul.f32 %v1661_v18, %v1192_v8  ;;  %v1100_v12 = vadd.f32 %v1099_v9, %v1003_v7 }
 0x19a   :  { %v1101_v11 = vpop.f32.mrf.mxu0  ;;  %v1198_v50 = vpop.f32.mrf.mxu1 }
 0x19b   :  { %1474 = vst [vmem:[#allocation7 + $0x68] sm:$0xff] %v1458_v10  ;;  %v1197_v49 = vadd.f32 %v1196_v13, %v1100_v12 }
 0x19c   :  { %v1102_v24 = vpop.f32.mrf.mxu0  ;;  %v1199_v20 = vpop.f32.mrf.mxu1 }
 0x19d   :  { %v1459_v15 = vmul.f32 %v1663_v35, %v1197_v49  ;;  %v1103_v16 = vadd.f32 %v1102_v24, %v1006_v14 }
 0x19e   :  { %v1104_v28 = vpop.f32.mrf.mxu0  ;;  %v1201_v27 = vpop.f32.mrf.mxu1 }
 0x19f   :  { %1475 = vst [vmem:[#allocation7 + $0x70] sm:$0xff] %v1459_v15  ;;  %v1200_v19 = vadd.f32 %v1199_v20, %v1103_v16 }
 0x1a1   :  { %v1460_v26 = vmul.f32 %v1665_v21, %v1200_v19 }
 0x1a3   :  { %1476 = vst [vmem:[#allocation7 + $0x78] sm:$0xff] %v1460_v26 }
 0x1a4   :  { %1717 = shalt.err (!%p1714_p0)
}
 0x1a5   :  { %s1738_s6 = smov 128   ;;  %s1739_s7 = smov 8  }
 0x1a6   :  { %1488 = dma.vmem_to_hbm [thread:$0]  %s1483_s30, 2048, %s1959_s4, [#allocation4], %s1738_s6, %s1738_s6, %s1739_s7  }
 0x1a7   :  { %1730 = dma.done.wait [#allocation4], 2048  }
 0x1a8   :  { %1731 = vsyncadd [#allocation4], 4294965248 }
 0x1a9   :  { %1492 = vsyncpa [#allocation3], 1 }
 0x1aa   :  { %1493 = vsyncpa [#allocation6], 1 }
 0x1ab   :  { %1494 = vsyncpa [#allocation4], 1 }

</bundles_post_ra>
